<compile_context>
chip_gen: v7x
topology: tpu7x:2x2x1
jax: 0.10.0
libtpu: 0.0.40
codegen_flags: <defaults>
</compile_context>

<pallas_src>
import jax
import jax.numpy as jnp
from jax.experimental import pallas as pl
from jax.experimental.pallas import tpu as pltpu


def _round_up(n: int, m: int) -> int:
    return ((n + m - 1) // m) * m


def _mood_kernel(x_ref, w1_ref, b1_ref, w2_ref, b2_ref, w3_ref, b3_ref,
                 w4_ref, b4_ref, o_ref):
    # One XLU transpose per tile: batch lives on the 128-lane axis from here on.
    xt = x_ref[...].T.astype(w1_ref.dtype)                     # (in_dim, TB)

    # Layer 1: Linear(in_dim -> 128) + ReLU   (Dropout = identity at inference)
    h = jnp.dot(w1_ref[...], xt, preferred_element_type=jnp.float32)   # (128, TB)
    h = jnp.maximum(h + b1_ref[...], 0.0)

    # Layer 2: Linear(128 -> 64) + ReLU       (Dropout = identity at inference)
    h = jnp.dot(w2_ref[...], h.astype(w2_ref.dtype),
                preferred_element_type=jnp.float32)                     # (64, TB)
    h = jnp.maximum(h + b2_ref[...], 0.0)

    # Layer 3: Linear(64 -> 32) + ReLU
    h = jnp.dot(w3_ref[...], h.astype(w3_ref.dtype),
                preferred_element_type=jnp.float32)                     # (32, TB)
    h = jnp.maximum(h + b3_ref[...], 0.0)

    # Layer 4: Linear(32 -> num_moods); padded mood rows carry a -1e30 bias.
    logits = jnp.dot(w4_ref[...], h.astype(w4_ref.dtype),
                     preferred_element_type=jnp.float32)                # (M_pad, TB)
    logits = logits + b4_ref[...]

    # Numerically stable softmax over the mood axis (axis 0), divide on the EUP.
    m = jnp.max(logits, axis=0, keepdims=True)
    e = jnp.exp(logits - m)                       # padded rows -> exp(-huge) == 0
    s = jnp.sum(e, axis=0, keepdims=True)
    inv = pl.reciprocal(s, approx=True)
    inv = inv * (2.0 - s * inv)                   # one Newton step -> ~f32 exact
    o_ref[...] = (e * inv).astype(o_ref.dtype)


def mood_classifier_forward(x, params, *, tile_b: int = 1024,
                            use_bf16: bool = True,
                            lane_major_output: bool = False):
    """x: (B, input_dim) float32.
    params: PyTorch layout -- w{i}: (out_features, in_features), b{i}: (out_features,).
    Returns (B, num_moods) float32 softmax probs (or (num_moods, B) if
    lane_major_output=True, avoiding the wrapper-side transpose)."""
    B, in_dim = x.shape
    num_moods = params["w4"].shape[0]
    M_pad = _round_up(max(num_moods, 8), 8)       # sublane-aligned mood dim

    # ---- batch tile: x is never padded; grid handles a ragged last tile ------
    tile_b = max(128, min(_round_up(tile_b, 128), 2048))   # cap for v7x VMEM
    if B <= 256:
        TB = B                                    # exact single tile (block == array)
    else:
        # >= 2 tiles so both v7x TensorCores get work on the "parallel" axis.
        TB = min(tile_b, _round_up(pl.cdiv(B, 2), 128))
    num_tiles = pl.cdiv(B, TB)

    # ---- weights: PyTorch (out, in) layout; biases as (out, 1) f32 columns ---
    w_dtype = jnp.bfloat16 if use_bf16 else jnp.float32
    w1 = params["w1"].astype(w_dtype)                                   # (128, in_dim)
    w2 = params["w2"].astype(w_dtype)                                   # (64, 128)
    w3 = params["w3"].astype(w_dtype)                                   # (32, 64)
    w4 = jnp.pad(params["w4"], ((0, M_pad - num_moods), (0, 0))).astype(w_dtype)
    b1 = params["b1"].reshape(-1, 1).astype(jnp.float32)
    b2 = params["b2"].reshape(-1, 1).astype(jnp.float32)
    b3 = params["b3"].reshape(-1, 1).astype(jnp.float32)
    b4 = jnp.pad(params["b4"].reshape(-1, 1).astype(jnp.float32),
                 ((0, M_pad - num_moods), (0, 0)), constant_values=-1e30)

    def resident(a):   # whole array, VMEM-resident across all batch tiles
        return pl.BlockSpec(a.shape, lambda i: (0, 0))

    in_specs = [
        pl.BlockSpec((TB, in_dim), lambda i: (i, 0)),   # x: pipelined, unpadded
        resident(w1), resident(b1),
        resident(w2), resident(b2),
        resident(w3), resident(b3),
        resident(w4), resident(b4),
    ]
    out_spec = pl.BlockSpec((M_pad, TB), lambda i: (0, i))  # lane-dense output

    args = (x, w1, b1, w2, b2, w3, b3, w4, b4)
    bytes_accessed = sum(int(a.size) * a.dtype.itemsize for a in args)
    bytes_accessed += M_pad * B * 4
    cost = pl.CostEstimate(
        flops=2 * B * (in_dim * 128 + 128 * 64 + 64 * 32 + 32 * M_pad),
        transcendentals=B * (M_pad + 1),
        bytes_accessed=bytes_accessed,
    )

    out = pl.pallas_call(
        _mood_kernel,
        out_shape=jax.ShapeDtypeStruct((M_pad, B), jnp.float32),
        grid=(num_tiles,),
        in_specs=in_specs,
        out_specs=out_spec,
        compiler_params=pltpu.CompilerParams(
            dimension_semantics=("parallel",)),
        cost_estimate=cost,
    )(*args)

    probs = out[:num_moods, :]                    # (num_moods, B), lane-major
    if lane_major_output:
        return probs
    return probs.T                                # PyTorch layout (B, num_moods)


def init_params(input_dim=100, num_moods=6, key=jax.random.PRNGKey(42)):
    """Deterministic synthetic init mimicking PyTorch uniform(-1/sqrt(fan_in), +),
    stored in the PyTorch layout: w (out, in), b (out,)."""
    dims = [(input_dim, 128), (128, 64), (64, 32), (32, num_moods)]
    params = {}
    for i, (fan_in, fan_out) in enumerate(dims, start=1):
        key, kw, kb = jax.random.split(key, 3)
        bound = 1.0 / (fan_in ** 0.5)
        params[f"w{i}"] = jax.random.uniform(
            kw, (fan_out, fan_in), jnp.float32, -bound, bound)
        params[f"b{i}"] = jax.random.uniform(
            kb, (fan_out,), jnp.float32, -bound, bound)
    return params


def reference_forward(x, params):
    """Pure-JAX reference (eval mode: dropout = identity)."""
    h = jnp.maximum(x @ params["w1"].T + params["b1"], 0.0)
    h = jnp.maximum(h @ params["w2"].T + params["b2"], 0.0)
    h = jnp.maximum(h @ params["w3"].T + params["b3"], 0.0)
    return jax.nn.softmax(h @ params["w4"].T + params["b4"], axis=-1)


if __name__ == "__main__":
    input_dim = 100
    num_moods = 6
    batch = 8

    key = jax.random.PRNGKey(0)
    x = jax.random.normal(key, (batch, input_dim), jnp.float32)
    params = init_params(input_dim, num_moods)
    ref = reference_forward(x, params)

    # f32 path: tight check against the pure-JAX reference.
    out = jax.block_until_ready(mood_classifier_forward(x, params, use_bf16=False))
    assert out.shape == (batch, num_moods), out.shape
    assert jnp.allclose(out, ref, atol=1e-4, rtol=1e-4), float(jnp.max(jnp.abs(out - ref)))
    assert jnp.allclose(out.sum(axis=1), 1.0, atol=1e-4)

    # bf16 MXU-operand path (the default): loose check against the f32 reference.
    out_bf16 = jax.block_until_ready(mood_classifier_forward(x, params))
    assert out_bf16.shape == (batch, num_moods), out_bf16.shape
    assert jnp.allclose(out_bf16, ref, atol=5e-2), float(jnp.max(jnp.abs(out_bf16 - ref)))

    # Multi-tile + ragged last tile path (grid = cdiv(B, TB), no batch padding).
    batch2 = 300
    x2 = jax.random.normal(jax.random.PRNGKey(1), (batch2, input_dim), jnp.float32)
    ref2 = reference_forward(x2, params)
    out2 = jax.block_until_ready(mood_classifier_forward(x2, params, use_bf16=False))
    assert out2.shape == (batch2, num_moods), out2.shape
    assert jnp.allclose(out2, ref2, atol=1e-4, rtol=1e-4), float(jnp.max(jnp.abs(out2 - ref2)))

    print("KERNEL_OK")
</pallas_src>

<mosaic_0001>
module attributes {stable_mosaic.version = 11 : i64} {
  func.func @_mood_kernel(%arg0: i32, %arg1: memref<8x100xf32, #tpu.memory_space<vmem>>, %arg2: memref<128x100xf32, #tpu.memory_space<vmem>>, %arg3: memref<128x1xf32, #tpu.memory_space<vmem>>, %arg4: memref<64x128xf32, #tpu.memory_space<vmem>>, %arg5: memref<64x1xf32, #tpu.memory_space<vmem>>, %arg6: memref<32x64xf32, #tpu.memory_space<vmem>>, %arg7: memref<32x1xf32, #tpu.memory_space<vmem>>, %arg8: memref<8x32xf32, #tpu.memory_space<vmem>>, %arg9: memref<8x1xf32, #tpu.memory_space<vmem>>, %arg10: memref<8x8xf32, #tpu.memory_space<vmem>>) attributes {dimension_semantics = [#tpu.dimension_semantics<parallel>], iteration_bounds = array<i64: 1>, scalar_prefetch = 0 : i64, scratch_operands = 0 : i64, tpu.core_type = #tpu.core_type<tc>, window_params = [{transform_indices = @transform_0, window_bounds = array<i64: 8, 100>}, {pipeline_mode = #tpu.pipeline_mode<synchronous>, transform_indices = @transform_1, window_bounds = array<i64: 128, 100>}, {pipeline_mode = #tpu.pipeline_mode<synchronous>, transform_indices = @transform_2, window_bounds = array<i64: 128, 1>}, {pipeline_mode = #tpu.pipeline_mode<synchronous>, transform_indices = @transform_3, window_bounds = array<i64: 64, 128>}, {pipeline_mode = #tpu.pipeline_mode<synchronous>, transform_indices = @transform_4, window_bounds = array<i64: 64, 1>}, {pipeline_mode = #tpu.pipeline_mode<synchronous>, transform_indices = @transform_5, window_bounds = array<i64: 32, 64>}, {pipeline_mode = #tpu.pipeline_mode<synchronous>, transform_indices = @transform_6, window_bounds = array<i64: 32, 1>}, {pipeline_mode = #tpu.pipeline_mode<synchronous>, transform_indices = @transform_7, window_bounds = array<i64: 8, 32>}, {pipeline_mode = #tpu.pipeline_mode<synchronous>, transform_indices = @transform_8, window_bounds = array<i64: 8, 1>}, {transform_indices = @transform_9, window_bounds = array<i64: 8, 8>}]} {
    %c0 = arith.constant 0 : index
    %c0_0 = arith.constant 0 : index
    %0 = vector.load %arg1[%c0, %c0_0] : memref<8x100xf32, #tpu.memory_space<vmem>>, vector<8x100xf32>
    %1 = tpu.transpose %0, [1, 0] : vector<8x100xf32> -> vector<100x8xf32>
    %c0_1 = arith.constant 0 : index
    %c0_2 = arith.constant 0 : index
    %2 = vector.load %arg2[%c0_1, %c0_2] : memref<128x100xf32, #tpu.memory_space<vmem>>, vector<128x100xf32>
    %cst = arith.constant dense<0.000000e+00> : vector<128x8xf32>
    %3 = tpu.matmul %2, %1, %cst {dimension_numbers = #tpu.dot_dimension_numbers<[1], [0], [0], [1], [0, 0, 1, 1], [], []>} : vector<128x100xf32>, vector<100x8xf32>, vector<128x8xf32> -> vector<128x8xf32>
    %c0_3 = arith.constant 0 : index
    %c0_4 = arith.constant 0 : index
    %4 = vector.load %arg3[%c0_3, %c0_4] : memref<128x1xf32, #tpu.memory_space<vmem>>, vector<128x1xf32>
    %5 = vector.broadcast %4 : vector<128x1xf32> to vector<128x8xf32>
    %6 = arith.addf %3, %5 : vector<128x8xf32>
    %cst_5 = arith.constant 0.000000e+00 : f32
    %7 = vector.broadcast %cst_5 : f32 to vector<128x8xf32>
    %8 = arith.maximumf %6, %7 : vector<128x8xf32>
    %c0_6 = arith.constant 0 : index
    %c0_7 = arith.constant 0 : index
    %9 = vector.load %arg4[%c0_6, %c0_7] : memref<64x128xf32, #tpu.memory_space<vmem>>, vector<64x128xf32>
    %cst_8 = arith.constant dense<0.000000e+00> : vector<64x8xf32>
    %10 = tpu.matmul %9, %8, %cst_8 {dimension_numbers = #tpu.dot_dimension_numbers<[1], [0], [0], [1], [0, 0, 1, 1], [], []>} : vector<64x128xf32>, vector<128x8xf32>, vector<64x8xf32> -> vector<64x8xf32>
    %c0_9 = arith.constant 0 : index
    %c0_10 = arith.constant 0 : index
    %11 = vector.load %arg5[%c0_9, %c0_10] : memref<64x1xf32, #tpu.memory_space<vmem>>, vector<64x1xf32>
    %12 = vector.broadcast %11 : vector<64x1xf32> to vector<64x8xf32>
    %13 = arith.addf %10, %12 : vector<64x8xf32>
    %cst_11 = arith.constant 0.000000e+00 : f32
    %14 = vector.broadcast %cst_11 : f32 to vector<64x8xf32>
    %15 = arith.maximumf %13, %14 : vector<64x8xf32>
    %c0_12 = arith.constant 0 : index
    %c0_13 = arith.constant 0 : index
    %16 = vector.load %arg6[%c0_12, %c0_13] : memref<32x64xf32, #tpu.memory_space<vmem>>, vector<32x64xf32>
    %cst_14 = arith.constant dense<0.000000e+00> : vector<32x8xf32>
    %17 = tpu.matmul %16, %15, %cst_14 {dimension_numbers = #tpu.dot_dimension_numbers<[1], [0], [0], [1], [0, 0, 1, 1], [], []>} : vector<32x64xf32>, vector<64x8xf32>, vector<32x8xf32> -> vector<32x8xf32>
    %c0_15 = arith.constant 0 : index
    %c0_16 = arith.constant 0 : index
    %18 = vector.load %arg7[%c0_15, %c0_16] : memref<32x1xf32, #tpu.memory_space<vmem>>, vector<32x1xf32>
    %19 = vector.broadcast %18 : vector<32x1xf32> to vector<32x8xf32>
    %20 = arith.addf %17, %19 : vector<32x8xf32>
    %cst_17 = arith.constant 0.000000e+00 : f32
    %21 = vector.broadcast %cst_17 : f32 to vector<32x8xf32>
    %22 = arith.maximumf %20, %21 : vector<32x8xf32>
    %c0_18 = arith.constant 0 : index
    %c0_19 = arith.constant 0 : index
    %23 = vector.load %arg8[%c0_18, %c0_19] : memref<8x32xf32, #tpu.memory_space<vmem>>, vector<8x32xf32>
    %cst_20 = arith.constant dense<0.000000e+00> : vector<8x8xf32>
    %24 = tpu.matmul %23, %22, %cst_20 {dimension_numbers = #tpu.dot_dimension_numbers<[1], [0], [0], [1], [0, 0, 1, 1], [], []>} : vector<8x32xf32>, vector<32x8xf32>, vector<8x8xf32> -> vector<8x8xf32>
    %c0_21 = arith.constant 0 : index
    %c0_22 = arith.constant 0 : index
    %25 = vector.load %arg9[%c0_21, %c0_22] : memref<8x1xf32, #tpu.memory_space<vmem>>, vector<8x1xf32>
    %26 = vector.broadcast %25 : vector<8x1xf32> to vector<8x8xf32>
    %27 = arith.addf %24, %26 : vector<8x8xf32>
    %cst_23 = arith.constant dense<0xFF800000> : vector<8xf32>
    %28 = vector.multi_reduction <maximumf>, %27, %cst_23 [0] : vector<8x8xf32> to vector<8xf32>
    %29 = vector.shape_cast %28 : vector<8xf32> to vector<1x8xf32>
    %30 = vector.broadcast %29 : vector<1x8xf32> to vector<8x8xf32>
    %31 = arith.subf %27, %30 : vector<8x8xf32>
    %32 = math.exp %31 : vector<8x8xf32>
    %cst_24 = arith.constant dense<0.000000e+00> : vector<8xf32>
    %33 = vector.multi_reduction <add>, %32, %cst_24 [0] : vector<8x8xf32> to vector<8xf32>
    %34 = vector.shape_cast %33 : vector<8xf32> to vector<1x8xf32>
    %35 = tpu.reciprocal %34 {approx = true} : vector<1x8xf32> -> vector<1x8xf32>
    %36 = arith.mulf %34, %35 : vector<1x8xf32>
    %cst_25 = arith.constant 2.000000e+00 : f32
    %37 = vector.broadcast %cst_25 : f32 to vector<1x8xf32>
    %38 = arith.subf %37, %36 : vector<1x8xf32>
    %39 = arith.mulf %35, %38 : vector<1x8xf32>
    %40 = vector.broadcast %39 : vector<1x8xf32> to vector<8x8xf32>
    %41 = arith.mulf %32, %40 : vector<8x8xf32>
    %c0_26 = arith.constant 0 : index
    %c0_27 = arith.constant 0 : index
    %42 = vector.load %arg10[%c0_26, %c0_27] : memref<8x8xf32, #tpu.memory_space<vmem>>, vector<8x8xf32>
    tpu.vector_store %arg10[%c0_26, %c0_27], %41 {strides = array<i32>} : memref<8x8xf32, #tpu.memory_space<vmem>>, vector<8x8xf32>,
    return
  }
  func.func @transform_0(%arg0: i32) -> (i32, i32) {
    %c0_i32 = arith.constant 0 : i32
    %c0_i32_0 = arith.constant 0 : i32
    return %arg0, %c0_i32 : i32, i32
  }
  func.func @transform_1(%arg0: i32) -> (i32, i32) {
    %c0_i32 = arith.constant 0 : i32
    %c0_i32_0 = arith.constant 0 : i32
    %c0_i32_1 = arith.constant 0 : i32
    return %c0_i32, %c0_i32_0 : i32, i32
  }
  func.func @transform_2(%arg0: i32) -> (i32, i32) {
    %c0_i32 = arith.constant 0 : i32
    %c0_i32_0 = arith.constant 0 : i32
    %c0_i32_1 = arith.constant 0 : i32
    return %c0_i32, %c0_i32_0 : i32, i32
  }
  func.func @transform_3(%arg0: i32) -> (i32, i32) {
    %c0_i32 = arith.constant 0 : i32
    %c0_i32_0 = arith.constant 0 : i32
    %c0_i32_1 = arith.constant 0 : i32
    return %c0_i32, %c0_i32_0 : i32, i32
  }
  func.func @transform_4(%arg0: i32) -> (i32, i32) {
    %c0_i32 = arith.constant 0 : i32
    %c0_i32_0 = arith.constant 0 : i32
    %c0_i32_1 = arith.constant 0 : i32
    return %c0_i32, %c0_i32_0 : i32, i32
  }
  func.func @transform_5(%arg0: i32) -> (i32, i32) {
    %c0_i32 = arith.constant 0 : i32
    %c0_i32_0 = arith.constant 0 : i32
    %c0_i32_1 = arith.constant 0 : i32
    return %c0_i32, %c0_i32_0 : i32, i32
  }
  func.func @transform_6(%arg0: i32) -> (i32, i32) {
    %c0_i32 = arith.constant 0 : i32
    %c0_i32_0 = arith.constant 0 : i32
    %c0_i32_1 = arith.constant 0 : i32
    return %c0_i32, %c0_i32_0 : i32, i32
  }
  func.func @transform_7(%arg0: i32) -> (i32, i32) {
    %c0_i32 = arith.constant 0 : i32
    %c0_i32_0 = arith.constant 0 : i32
    %c0_i32_1 = arith.constant 0 : i32
    return %c0_i32, %c0_i32_0 : i32, i32
  }
  func.func @transform_8(%arg0: i32) -> (i32, i32) {
    %c0_i32 = arith.constant 0 : i32
    %c0_i32_0 = arith.constant 0 : i32
    %c0_i32_1 = arith.constant 0 : i32
    return %c0_i32, %c0_i32_0 : i32, i32
  }
  func.func @transform_9(%arg0: i32) -> (i32, i32) {
    %c0_i32 = arith.constant 0 : i32
    %c0_i32_0 = arith.constant 0 : i32
    return %c0_i32, %arg0 : i32, i32
  }
}

</mosaic_0001>

<bundles_post_ra>
// kernel: tpu_custom_call.1
= control target key start
LH: loop header
LB: loop body
LE: loop exit
PB: predicated region body
PF: predicated region fallthrough
CT: control target
= control target key end

     0   :  { %vm146_vm0 = vcmask 818176   ;;  %v1049_v3 = vmov 0   ;;  %s1318_s0 = inlined_call_operand.vmem [shape: f32[8,100], index: 0, kind: input, shape index: {}]   ;;  %s1319_s1 = inlined_call_operand.vmem [shape: f32[128,100], index: 1, kind: input, shape index: {}]   ;;  %s1320_s2 = inlined_call_operand.vmem [shape: f32[128,1], index: 2, kind: input, shape index: {}]   ;;  %s1321_s3 = inlined_call_operand.vmem [shape: f32[64,128], index: 3, kind: input, shape index: {}]   ;;  %s1322_s4 = inlined_call_operand.vmem [shape: f32[64,1], index: 4, kind: input, shape index: {}]   ;;  %s1323_s5 = inlined_call_operand.vmem [shape: f32[32,64], index: 5, kind: input, shape index: {}]   ;;  %s1324_s6 = inlined_call_operand.vmem [shape: f32[32,1], index: 6, kind: input, shape index: {}]   ;;  %s1325_s7 = inlined_call_operand.vmem [shape: f32[8,32], index: 7, kind: input, shape index: {}]   ;;  %s1326_s8 = inlined_call_operand.vmem [shape: f32[8,1], index: 8, kind: input, shape index: {}]   ;;  %s1327_s9 = inlined_call_operand.hbm [shape: f32[8,8], index: 9, kind: output, shape index: {}]  }
   0x1   :  { %v33_v0 = vld [vmem:[%s1318_s0] sm:$0xff]  ;;  %v35_v2 = vld [vmem:[%s1319_s1 + $0x8] sm:$0xff]  ;;  %1019 = vset.pattern.permute.xlu0 %v1049_v3  ;;  %v36_v4 = vld [vmem:[%s1319_s1 + $0x10] sm:$0xff]  ;;  %1020 = vset.pattern.permute.xlu1 %v1049_v3 }
   0x2   :  { %v34_v1 = vld [vmem:[%s1319_s1] sm:$0xff]  ;;  %857 = vmatprep.subr.msk.mxu0 %vm146_vm0, %v33_v0  ;;  %v37_v6 = vld [vmem:[%s1319_s1 + $0x18] sm:$0xff]  ;;  %v52_v7 = vld [vmem:[%s1320_s2 + $0x10] sm:$0xff] }
   0x3   :  { %859 = vmatprep.mubr.msk.f32.mxu0 %vm146_vm0, %v34_v1  ;;  %858 = vmatpush3.xpose.msk.msra.mxu0 %vm146_vm0, %v33_v0  ;;  %v50_v5 = vld [vmem:[%s1320_s2] sm:$0xff]  ;;  %v51_v9 = vld [vmem:[%s1320_s2 + $0x8] sm:$0xff]  ;;  %v53_v10 = vld [vmem:[%s1320_s2 + $0x18] sm:$0xff] }
   0x4   :  { %68 = vperm.xlu0 %1019, %v50_v5   ;;  %v38_v8 = vld [vmem:[%s1319_s1 + $0x20] sm:$0xff]  ;;  %78 = vperm.xlu1 %1020, %v52_v7   ;;  %v39_v11 = vld [vmem:[%s1319_s1 + $0x28] sm:$0xff]  ;;  %v40_v12 = vld [vmem:[%s1319_s1 + $0x30] sm:$0xff] }
   0x5   :  { %v54_v13 = vld [vmem:[%s1320_s2 + $0x20] sm:$0xff]  ;;  %v55_v14 = vld [vmem:[%s1320_s2 + $0x28] sm:$0xff]  ;;  %v41_v15 = vld [vmem:[%s1319_s1 + $0x38] sm:$0xff] }
   0x6   :  { %860 = vmatmul.mubr.msk.f32.vlgmr.msra.gmra.mrb[0].mxu0 %vm146_vm0, %v35_v2  ;;  %v42_v16 = vld [vmem:[%s1319_s1 + $0x40] sm:$0xff]  ;;  %v56_v17 = vld [vmem:[%s1320_s2 + $0x30] sm:$0xff] }
   0x7   :  { %862 = vmatprep.mubr.msk.f32.mxu0 %vm146_vm0, %v36_v4 }
   0x8   :  { %73 = vperm.xlu0 %1019, %v51_v9   ;;  %83 = vperm.xlu1 %1020, %v53_v10  }
   0xa   :  { %863 = vmatmul.mubr.msk.f32.gmra.mrb[2].mxu0 %vm146_vm0, %v37_v6 }
   0xb   :  { %865 = vmatprep.mubr.msk.f32.mxu0 %vm146_vm0, %v38_v8 }
   0xc   :  { %88 = vperm.xlu0 %1019, %v54_v13   ;;  %93 = vperm.xlu1 %1020, %v55_v14  }
   0xe   :  { %866 = vmatmul.mubr.msk.f32.gmra.mrb[4].mxu0 %vm146_vm0, %v39_v11 }
   0xf   :  { %868 = vmatprep.mubr.msk.f32.mxu0 %vm146_vm0, %v40_v12 }
  0x10   :  { %14 = vsyncpa [#allocation3], 0  ;;  %v57_v18 = vld [vmem:[%s1320_s2 + $0x38] sm:$0xff]  ;;  %v43_v19 = vld [vmem:[%s1319_s1 + $0x48] sm:$0xff]  ;;  %98 = vperm.xlu0 %1019, %v56_v17   ;;  %vm556_vm1 = vcmask 523264   ;;  %vm1051_vm2 = vmmov 0  }
  0x11   :  { %v44_v20 = vld [vmem:[%s1319_s1 + $0x50] sm:$0xff]  ;;  %v58_v21 = vld [vmem:[%s1320_s2 + $0x40] sm:$0xff]  ;;  %103 = vperm.xlu1 %1020, %v57_v18   ;;  %v59_v22 = vld [vmem:[%s1320_s2 + $0x48] sm:$0xff]  ;;  %vm665_vm3 = vcmask 261120   ;;  %vm739_vm4 = vcmask 64512  }
  0x12   :  { %869 = vmatmul.mubr.msk.f32.gmra.mrb[6].mxu0 %vm146_vm0, %v41_v15  ;;  %v45_v23 = vld [vmem:[%s1319_s1 + $0x58] sm:$0xff]  ;;  %v46_v24 = vld [vmem:[%s1319_s1 + $0x60] sm:$0xff]  ;;  %v60_v25 = vld [vmem:[%s1320_s2 + $0x50] sm:$0xff] }
  0x13   :  { %871 = vmatprep.mubr.msk.f32.mxu0 %vm146_vm0, %v42_v16  ;;  %v61_v26 = vld [vmem:[%s1320_s2 + $0x58] sm:$0xff]  ;;  %v47_v27 = vld [vmem:[%s1319_s1 + $0x68] sm:$0xff]  ;;  %v48_v28 = vld [vmem:[%s1319_s1 + $0x70] sm:$0xff] }
  0x14   :  { %108 = vperm.xlu0 %1019, %v58_v21   ;;  %v62_v29 = vld [vmem:[%s1320_s2 + $0x60] sm:$0xff]  ;;  %v63_v30 = vld [vmem:[%s1320_s2 + $0x68] sm:$0xff]  ;;  %v49_v31 = vld [vmem:[%s1319_s1 + $0x78] sm:$0xff] }
  0x15   :  { %113 = vperm.xlu1 %1020, %v59_v22   ;;  %v64_v32 = vld [vmem:[%s1320_s2 + $0x70] sm:$0xff]  ;;  %v65_v33 = vld [vmem:[%s1320_s2 + $0x78] sm:$0xff]  ;;  %v367_v34 = vld [vmem:[%s1322_s4] sm:$0xff] }
  0x16   :  { %872 = vmatmul.mubr.msk.f32.gmra.mrb[8].mxu0 %vm146_vm0, %v43_v19  ;;  %v368_v35 = vld [vmem:[%s1322_s4 + $0x8] sm:$0xff]  ;;  %v369_v36 = vld [vmem:[%s1322_s4 + $0x10] sm:$0xff]  ;;  %v370_v37 = vld [vmem:[%s1322_s4 + $0x18] sm:$0xff] }
  0x17   :  { %874 = vmatprep.mubr.msk.f32.mxu0 %vm146_vm0, %v44_v20  ;;  %v371_v38 = vld [vmem:[%s1322_s4 + $0x20] sm:$0xff]  ;;  %v372_v39 = vld [vmem:[%s1322_s4 + $0x28] sm:$0xff]  ;;  %v373_v40 = vld [vmem:[%s1322_s4 + $0x30] sm:$0xff] }
  0x18   :  { %118 = vperm.xlu0 %1019, %v60_v25   ;;  %v374_v41 = vld [vmem:[%s1322_s4 + $0x38] sm:$0xff]  ;;  %v532_v42 = vld [vmem:[%s1324_s6] sm:$0xff]  ;;  %v533_v43 = vld [vmem:[%s1324_s6 + $0x8] sm:$0xff] }
  0x19   :  { %123 = vperm.xlu1 %1020, %v61_v26   ;;  %v534_v44 = vld [vmem:[%s1324_s6 + $0x10] sm:$0xff]  ;;  %v535_v45 = vld [vmem:[%s1324_s6 + $0x18] sm:$0xff]  ;;  %v659_v46 = vld [vmem:[%s1326_s8] sm:$0xff] }
  0x1a   :  { %875 = vmatmul.mubr.msk.f32.gmra.mrb[10].mxu0 %vm146_vm0, %v45_v23  ;;  %v359_v47 = vld [vmem:[%s1321_s3] sm:$0xff] }
  0x1b   :  { %877 = vmatprep.mubr.msk.f32.mxu0 %vm146_vm0, %v46_v24  ;;  %915 = vmatprep.mubr.f32.mxu1 %v359_v47 }
  0x1c   :  { %128 = vperm.xlu0 %1019, %v62_v29  }
  0x1d   :  { %133 = vperm.xlu1 %1020, %v63_v30  }
  0x1e   :  { %878 = vmatmul.mubr.msk.f32.gmra.mrb[12].mxu0 %vm146_vm0, %v47_v27 }
  0x1f   :  { %880 = vmatprep.mubr.msk.f32.mxu0 %vm146_vm0, %v48_v28 }
  0x20   :  { %138 = vperm.xlu0 %1019, %v64_v32  }
  0x21   :  { %143 = vperm.xlu1 %1020, %v65_v33  }
  0x22   :  { %881 = vmatmul.mubr.msk.f32.gmra.mrb[14].mxu0 %vm146_vm0, %v49_v31 }
  0x24   :  { %377 = vperm.xlu0 %1019, %v367_v34  }
  0x25   :  { %382 = vperm.xlu1 %1020, %v368_v35  }
  0x28   :  { %387 = vperm.xlu0 %1019, %v369_v36  }
  0x29   :  { %392 = vperm.xlu1 %1020, %v370_v37  }
  0x2c   :  { %397 = vperm.xlu0 %1019, %v371_v38  }
  0x2d   :  { %402 = vperm.xlu1 %1020, %v372_v39  }
  0x30   :  { %407 = vperm.xlu0 %1019, %v373_v40  }
  0x31   :  { %412 = vperm.xlu1 %1020, %v374_v41  }
  0x34   :  { %538 = vperm.xlu0 %1019, %v532_v42  }
  0x35   :  { %543 = vperm.xlu1 %1020, %v533_v43  }
  0x38   :  { %548 = vperm.xlu0 %1019, %v534_v44  }
  0x39   :  { %553 = vperm.xlu1 %1020, %v535_v45  }
  0x3c   :  { %662 = vperm.xlu0 %1019, %v659_v46  }
  0x83   :  { %v79_v48 = vpop.permute.xlu1 %78  ;;  %v69_v49 = vpop.permute.xlu0 %68 }
  0x87   :  { %v84_v50 = vpop.permute.xlu1 %83  ;;  %v74_v51 = vpop.permute.xlu0 %73 }
  0x8b   :  { %v94_v52 = vpop.permute.xlu1 %93  ;;  %v89_v53 = vpop.permute.xlu0 %88 }
  0x8f   :  { %v99_v62 = vpop.permute.xlu0 %98 }
  0x90   :  { %v104_v59 = vpop.permute.xlu1 %103 }
  0x93   :  { %v109_v11 = vpop.permute.xlu0 %108 }
  0x94   :  { %v114_v8 = vpop.permute.xlu1 %113 }
  0x97   :  { %v119_v23 = vpop.permute.xlu0 %118 }
  0x98   :  { %v124_v20 = vpop.permute.xlu1 %123 }
  0x9b   :  { %v129_v36 = vpop.permute.xlu0 %128 }
  0x9c   :  { %v134_v33 = vpop.permute.xlu1 %133 }
  0xa0   :  { %v144_v45 = vpop.permute.xlu1 %143 }
  0xd9   :  { %v861_v54 = vpop.f32.mrb[0].mxu0 }
  0xda   :  { %v270_v55 = vadd.f32 %v861_v54, %v74_v51  ;;  %v264_v56 = vpop.f32.mrb[1].mxu0 }
  0xdb   :  { %v265_v57 = vadd.f32 %v264_v56, %v69_v49  ;;  %v360_v56 = vld [vmem:[%s1321_s3 + $0x8] sm:$0xff] }
  0xdc   :  { %v344_v58 = vmax.f32 %v270_v55, 0.0 }
  0xdd   :  { %v343_v60 = vmax.f32 %v265_v57, 0.0  ;;  %v864_v61 = vpop.f32.mrb[2].mxu0  ;;  %v361_v57 = vld [vmem:[%s1321_s3 + $0x10] sm:$0xff] }
  0xde   :  { %v280_v63 = vadd.f32 %v864_v61, %v84_v50  ;;  %v274_v0 = vpop.f32.mrb[3].mxu0  ;;  %v365_v61 = vld [vmem:[%s1321_s3 + $0x30] sm:$0xff] }
  0xdf   :  { %v275_v1 = vadd.f32 %v274_v0, %v79_v48  ;;  %v960_v2 = vpack.c.bf16 %v344_v58, %v343_v60  ;;  %v139_v48 = vpop.permute.xlu0 %138  ;;  %v362_v58 = vld [vmem:[%s1321_s3 + $0x18] sm:$0xff]  ;;  %v364_v60 = vld [vmem:[%s1321_s3 + $0x28] sm:$0xff]  ;;  %v383_v0 = vpop.permute.xlu1 %382 }
  0xe0   :  { %v346_v3 = vmax.f32 %v280_v63, 0.0  ;;  %v528_v63 = vld [vmem:[%s1323_s5] sm:$0xff] }
  0xe1   :  { %v345_v4 = vmax.f32 %v275_v1, 0.0  ;;  %v867_v5 = vpop.f32.mrb[4].mxu0  ;;  %961 = vmatprep.subr.bf16.mxu1 %v960_v2  ;;  %943 = vmatprep.mubr.msk.f32.mxu0 %vm556_vm1, %v528_v63 }
  0xe2   :  { %v290_v6 = vadd.f32 %v867_v5, %v94_v52  ;;  %v284_v7 = vpop.f32.mrb[5].mxu0  ;;  %963 = vmatpush3.bf16.msra.mxu1 %v960_v2 }
  0xe3   :  { %v964_v9 = vpack.c.bf16 %v346_v3, %v345_v4  ;;  %v285_v10 = vadd.f32 %v284_v7, %v89_v53  ;;  %v378_v1 = vpop.permute.xlu0 %377  ;;  %v393_v2 = vpop.permute.xlu1 %392 }
  0xe4   :  { %v348_v12 = vmax.f32 %v290_v6, 0.0 }
  0xe5   :  { %v347_v13 = vmax.f32 %v285_v10, 0.0  ;;  %v870_v14 = vpop.f32.mrb[6].mxu0  ;;  %965 = vmatprep.subr.bf16.mxu1 %v964_v9 }
  0xe6   :  { %v300_v15 = vadd.f32 %v870_v14, %v104_v59  ;;  %v294_v16 = vpop.f32.mrb[7].mxu0  ;;  %967 = vmatpush3.bf16.msra.mxu1 %v964_v9  ;;  %v363_v59 = vld [vmem:[%s1321_s3 + $0x20] sm:$0xff] }
  0xe7   :  { %v968_v17 = vpack.c.bf16 %v348_v12, %v347_v13  ;;  %v295_v18 = vadd.f32 %v294_v16, %v99_v62  ;;  %v366_v62 = vld [vmem:[%s1321_s3 + $0x38] sm:$0xff]  ;;  %v388_v4 = vpop.permute.xlu0 %387  ;;  %v403_v13 = vpop.permute.xlu1 %402 }
  0xe8   :  { %v350_v19 = vmax.f32 %v300_v15, 0.0 }
  0xe9   :  { %v349_v21 = vmax.f32 %v295_v18, 0.0  ;;  %v873_v22 = vpop.f32.mrb[8].mxu0  ;;  %969 = vmatprep.subr.bf16.mxu1 %v968_v17 }
  0xea   :  { %v310_v24 = vadd.f32 %v873_v22, %v114_v8  ;;  %v304_v25 = vpop.f32.mrb[9].mxu0  ;;  %971 = vmatpush3.bf16.msra.mxu1 %v968_v17 }
  0xeb   :  { %v972_v26 = vpack.c.bf16 %v350_v19, %v349_v21  ;;  %v305_v27 = vadd.f32 %v304_v25, %v109_v11  ;;  %v398_v16 = vpop.permute.xlu0 %397  ;;  %v413_v25 = vpop.permute.xlu1 %412 }
  0xec   :  { %v352_v28 = vmax.f32 %v310_v24, 0.0 }
  0xed   :  { %v351_v29 = vmax.f32 %v305_v27, 0.0  ;;  %v876_v30 = vpop.f32.mrb[10].mxu0  ;;  %973 = vmatprep.subr.bf16.mxu1 %v972_v26 }
  0xee   :  { %v320_v31 = vadd.f32 %v876_v30, %v124_v20  ;;  %v314_v32 = vpop.f32.mrb[11].mxu0  ;;  %975 = vmatpush3.bf16.msra.mxu1 %v972_v26 }
  0xef   :  { %v976_v34 = vpack.c.bf16 %v352_v28, %v351_v29  ;;  %v315_v35 = vadd.f32 %v314_v32, %v119_v23  ;;  %v408_v28 = vpop.permute.xlu0 %407 }
  0xf0   :  { %v354_v37 = vmax.f32 %v320_v31, 0.0 }
  0xf1   :  { %v353_v38 = vmax.f32 %v315_v35, 0.0  ;;  %v879_v39 = vpop.f32.mrb[12].mxu0  ;;  %977 = vmatprep.subr.bf16.mxu1 %v976_v34 }
  0xf2   :  { %v330_v40 = vadd.f32 %v879_v39, %v134_v33  ;;  %v324_v41 = vpop.f32.mrb[13].mxu0  ;;  %979 = vmatpush3.bf16.msra.mxu1 %v976_v34  ;;  %v1050_v39 = vmov 0.0|0.0  }
  0xf3   :  { %v980_v42 = vpack.c.bf16 %v354_v37, %v353_v38  ;;  %v325_v43 = vadd.f32 %v324_v41, %v129_v36  ;;  %v529_v36 = vld [vmem:[%s1323_s5 + $0x8] sm:$0xff]  ;;  %v530_v37 = vld [vmem:[%s1323_s5 + $0x10] sm:$0xff]  ;;  %v531_v38 = vld [vmem:[%s1323_s5 + $0x18] sm:$0xff]  ;;  %v544_v41 = vpop.permute.xlu1 %543 }
  0xf4   :  { %v356_v44 = vmax.f32 %v330_v40, 0.0  ;;  %v1052_v40 = vmov 0.0  }
  0xf5   :  { %v355_v46 = vmax.f32 %v325_v43, 0.0  ;;  %v882_v47 = vpop.f32.mrb[14].mxu0  ;;  %981 = vmatprep.subr.bf16.mxu1 %v980_v42 }
  0xf6   :  { %v340_v49 = vadd.f32 %v882_v47, %v144_v45  ;;  %v334_v50 = vpop.f32.mrb[15].mxu0  ;;  %983 = vmatpush3.bf16.msra.mxu1 %v980_v42  ;;  %v539_v42 = vpop.permute.xlu0 %538 }
  0xf7   :  { %v984_v51 = vpack.c.bf16 %v356_v44, %v355_v46  ;;  %v335_v52 = vadd.f32 %v334_v50, %v139_v48  ;;  %v554_v48 = vpop.permute.xlu1 %553 }
  0xf8   :  { %v358_v53 = vmax.f32 %v340_v49, 0.0 }
  0xf9   :  { %v357_v54 = vmax.f32 %v335_v52, 0.0  ;;  %985 = vmatprep.subr.bf16.mxu1 %v984_v51 }
  0xfa   :  { %987 = vmatpush3.bf16.msra.mxu1 %v984_v51  ;;  %v549_v51 = vpop.permute.xlu0 %548 }
  0xfb   :  { %v988_v55 = vpack.c.bf16 %v358_v53, %v357_v54 }
  0xfd   :  { %989 = vmatprep.subr.bf16.mxu1 %v988_v55 }
  0xfe   :  { %991 = vmatpush3.bf16.msra.mxu1 %v988_v55 }
 0x101   :  { %916 = vmatmul.mubr.f32.vlgmr.msra.gmra.mrb[0].mxu1 %v360_v56 }
 0x102   :  { %918 = vmatprep.mubr.f32.mxu1 %v361_v57 }
 0x105   :  { %919 = vmatmul.mubr.f32.gmra.mrb[2].mxu1 %v362_v58 }
 0x106   :  { %921 = vmatprep.mubr.f32.mxu1 %v363_v59  ;;  %v658_v59 = vld [vmem:[%s1325_s7] sm:$0xff]  ;;  %s1053_s7 = smov [#allocation2]  }
 0x107   :  { %s769_s29 = sshll.u32 %s1053_s7, 4  ;;  %s770_s29 = int_to_ptr.vmem [resolvable:$true] %s769_s29 }
 0x108   :  { %s1025_s4 = scalar_lea.vmem %s770_s29, 128  ;;  %p1030_p1 = scmp.lt.s32.totalorder %s770_s29, %s770_s29 }
 0x109   :  { %922 = vmatmul.mubr.f32.gmra.mrb[4].mxu1 %v364_v60  ;;  %v663_v60 = vpop.permute.xlu0 %662  ;;  %p1026_p0 = scmp.ne.s32.totalorder %s770_s29, %s1025_s4  ;;  %p1031_p2 = scmp.lt.s32.totalorder %s1025_s4, %s1025_s4 }
 0x10a   :  { %924 = vmatprep.mubr.f32.mxu1 %v365_v61 }
 0x10b   :  { %p1032_p3 = por %p1031_p2, %p1030_p1 }
 0x10d   :  { %925 = vmatmul.mubr.f32.gmra.mrb[6].mxu1 %v366_v62  ;;  %p1033_p4 = pnand %p1032_p3, %p1026_p0 }
 0x1d4   :  { %v917_v3 = vpop.f32.mrb[0].mxu1 }
 0x1d5   :  { %v487_v5 = vadd.f32 %v917_v3, %v383_v0  ;;  %v481_v6 = vpop.f32.mrb[1].mxu1 }
 0x1d6   :  { %v482_v7 = vadd.f32 %v481_v6, %v378_v1 }
 0x1d7   :  { %v521_v8 = vmax.f32 %v487_v5, 0.0 }
 0x1d8   :  { %v520_v9 = vmax.f32 %v482_v7, 0.0  ;;  %v920_v10 = vpop.f32.mrb[2].mxu1 }
 0x1d9   :  { %v497_v11 = vadd.f32 %v920_v10, %v393_v2  ;;  %v491_v12 = vpop.f32.mrb[3].mxu1 }
 0x1da   :  { %v992_v14 = vpack.c.bf16 %v521_v8, %v520_v9  ;;  %v492_v15 = vadd.f32 %v491_v12, %v388_v4 }
 0x1db   :  { %v523_v17 = vmax.f32 %v497_v11, 0.0 }
 0x1dc   :  { %v522_v18 = vmax.f32 %v492_v15, 0.0  ;;  %v923_v19 = vpop.f32.mrb[4].mxu1  ;;  %993 = vmatprep.subr.bf16.mxu0 %v992_v14 }
 0x1dd   :  { %v507_v20 = vadd.f32 %v923_v19, %v403_v13  ;;  %v501_v21 = vpop.f32.mrb[5].mxu1  ;;  %995 = vmatpush3.bf16.msra.mxu0 %v992_v14 }
 0x1de   :  { %v996_v22 = vpack.c.bf16 %v523_v17, %v522_v18  ;;  %v502_v23 = vadd.f32 %v501_v21, %v398_v16 }
 0x1df   :  { %v525_v24 = vmax.f32 %v507_v20, 0.0 }
 0x1e0   :  { %v524_v26 = vmax.f32 %v502_v23, 0.0  ;;  %v926_v27 = vpop.f32.mrb[6].mxu1  ;;  %997 = vmatprep.subr.bf16.mxu0 %v996_v22 }
 0x1e1   :  { %v517_v29 = vadd.f32 %v926_v27, %v413_v25  ;;  %v511_v30 = vpop.f32.mrb[7].mxu1  ;;  %999 = vmatpush3.bf16.msra.mxu0 %v996_v22 }
 0x1e2   :  { %v1000_v31 = vpack.c.bf16 %v525_v24, %v524_v26  ;;  %v512_v32 = vadd.f32 %v511_v30, %v408_v28 }
 0x1e3   :  { %v527_v33 = vmax.f32 %v517_v29, 0.0 }
 0x1e4   :  { %v526_v34 = vmax.f32 %v512_v32, 0.0  ;;  %1001 = vmatprep.subr.bf16.mxu0 %v1000_v31 }
 0x1e5   :  { %1003 = vmatpush3.bf16.msra.mxu0 %v1000_v31 }
 0x1e6   :  { %v1004_v35 = vpack.c.bf16 %v527_v33, %v526_v34 }
 0x1e8   :  { %1005 = vmatprep.subr.bf16.mxu0 %v1004_v35 }
 0x1e9   :  { %1007 = vmatpush3.bf16.msra.mxu0 %v1004_v35 }
 0x1ea   :  { %1008 = vmatprep.subr.bf16.mxu0 %v1050_v39 }
 0x1ec   :  { %944 = vmatmul.mubr.msk.f32.vlgmr.msra.gmra.mrb[16].mxu0 %vm556_vm1, %v529_v36 }
 0x1ed   :  { %946 = vmatprep.mubr.msk.f32.mxu0 %vm556_vm1, %v530_v37 }
 0x1f0   :  { %947 = vmatmul.mubr.msk.f32.gmra.mrb[18].mxu0 %vm556_vm1, %v531_v38 }
 0x1f1   :  { %957 = vmatprep.mubr.msk.f32.mxu0 %vm1051_vm2, %v1052_v40 }
 0x2bf   :  { %v945_v43 = vpop.f32.mrb[16].mxu0 }
 0x2c0   :  { %v641_v44 = vadd.f32 %v945_v43, %v544_v41  ;;  %v635_v45 = vpop.f32.mrb[17].mxu0 }
 0x2c1   :  { %v636_v46 = vadd.f32 %v635_v45, %v539_v42 }
 0x2c2   :  { %v655_v47 = vmax.f32 %v641_v44, 0.0 }
 0x2c3   :  { %v654_v49 = vmax.f32 %v636_v46, 0.0  ;;  %v948_v50 = vpop.f32.mrb[18].mxu0 }
 0x2c4   :  { %v651_v52 = vadd.f32 %v948_v50, %v554_v48  ;;  %v645_v53 = vpop.f32.mrb[19].mxu0 }
 0x2c5   :  { %v1009_v54 = vpack.c.bf16 %v655_v47, %v654_v49  ;;  %v646_v55 = vadd.f32 %v645_v53, %v549_v51 }
 0x2c6   :  { %v657_v56 = vmax.f32 %v651_v52, 0.0 }
 0x2c7   :  { %v656_v57 = vmax.f32 %v646_v55, 0.0  ;;  %1010 = vmatpush3.bf16.msra.mxu0 %v1009_v54 }
 0x2c8   :  { %1011 = vmatprep.subr.bf16.mxu0 %v1050_v39 }
 0x2c9   :  { %v1012_v58 = vpack.c.bf16 %v657_v56, %v656_v57 }
 0x2cb   :  { %1013 = vmatpush3.bf16.msra.mxu0 %v1012_v58 }
 0x2ce   :  { %958 = vmatmul.mubr.msk.f32.vlgmr.msra.gmra.mrb[20].mxu0 %vm665_vm3, %v658_v59 }
 0x3a1   :  { %v735_v61 = vpop.f32.mrb[20].mxu0 }
 0x3a2   :  { %v736_v62 = vadd.f32 %v735_v61, %v663_v60  ;;  %v959_v63 = vpop.f32.mrb[21].mxu0 }
 0x3a4   :  { %v740_v0 = vsel %vm739_vm4, %v736_v62, -inf }
 0x3a5   :  { %v741_v1 = vrot.slane %v740_v0, 4 }
 0x3a7   :  { %v742_v2 = vmax.f32 %v740_v0, %v741_v1 }
 0x3a9   :  { %v743_v3 = vrot.slane %v742_v2, 2 }
 0x3ab   :  { %v744_v4 = vmax.f32 %v742_v2, %v743_v3 }
 0x3ad   :  { %v745_v5 = vrot.slane %v744_v4, 1 }
 0x3af   :  { %v746_v6 = vmax.f32 %v744_v4, %v745_v5 }
 0x3b1   :  { %v747_v7 = vsub.f32 %v736_v62, %v746_v6 }
 0x3b3   :  { %v748_v8 = vmul.f32 1.442695, %v747_v7 }
 0x3b5   :  { %1021 = vpow2.f32 %v748_v8 }
 0x3bf   :  { %v1022_v9 = vpop.eup %1021 }
 0x3c0   :  { %v750_v10 = vsel %vm739_vm4, %v1022_v9, 0.0 }
 0x3c1   :  { %v751_v11 = vrot.slane %v750_v10, 4 }
 0x3c3   :  { %v752_v12 = vadd.f32 %v751_v11, %v750_v10 }
 0x3c5   :  { %v753_v13 = vrot.slane %v752_v12, 2 }
 0x3c7   :  { %v754_v14 = vadd.f32 %v753_v13, %v752_v12 }
 0x3c9   :  { %v755_v15 = vrot.slane %v754_v14, 1 }
 0x3cb   :  { %v756_v16 = vadd.f32 %v755_v15, %v754_v14 }
 0x3cd   :  { %1023 = vrcp.f32 %v756_v16 }
 0x3d7   :  { %v1024_v17 = vpop.eup %1023 }
 0x3d8   :  { %v758_v18 = vmul.f32 %v1024_v17, %v756_v16 }
 0x3da   :  { %v759_v19 = vsub.f32 2.0, %v758_v18 }
 0x3dc   :  { %v760_v20 = vmul.f32 %v1024_v17, %v759_v19 }
 0x3de   :  { %v761_v21 = vmul.f32 %v1022_v9, %v760_v20 }
 0x3e0   :  { %762 = vst.msk [vmem:[#allocation2] sm:$0xff] %vm739_vm4, %v761_v21 }
 0x3e1   :  { %1036 = shalt.err (!%p1033_p4)
}
 0x3e2   :  { %s1037_s11 = scalar_lea.hbm %s1327_s9, 128 }
 0x3e3   :  { %p1038_p5 = scmp.ne.s32.totalorder %s1327_s9, %s1037_s11  ;;  %p1041_p6 = scmp.lt.u32.totalorder %s1037_s11, %s1327_s9 }
 0x3e5   :  { %p1043_p7 = pnand %p1041_p6, %p1038_p5 }
 0x3e7   :  { %1046 = shalt.err (!%p1043_p7)
}
 0x3e8   :  { %772 = dma.vmem_to_hbm [thread:$0]  %s770_s29, 128, %s1327_s9, [#allocation3]  }
 0x3e9   :  { %1047 = dma.done.wait [#allocation3], 128  }
 0x3ea   :  { %1048 = vsyncadd [#allocation3], 4294967168 }
 0x3eb   :  { %776 = vsyncpa [#allocation3], 1 }

</bundles_post_ra>
